<compile_context>
chip_gen: v5e
topology: v5e:2x2
jax: 0.10.0
libtpu: 0.0.40
codegen_flags: <defaults>
</compile_context>

<pallas_src>
import jax
import jax.numpy as jnp
from jax.experimental import pallas as pl
from jax.experimental.pallas import tpu as pltpu


def _copy_kernel(x_ref, o_ref):
    # Identity: copy the whole VMEM tile (bit-exact).
    o_ref[...] = x_ref[...]


def _choose_2d_view(total: int, itemsize: int, target_block_bytes: int):
    """Pick a lane-dense (rows, cols) view and a sublane-aligned row block.

    Returns None when `total` has no multiple-of-128 factorization; the caller
    then falls back to the true no-op path instead of pulling the whole tensor
    into VMEM (which could OOM, e.g. on v7x's 64 MiB VMEM).
    """
    cols = None
    for c in (4096, 2048, 1024, 512, 256, 128):
        if total % c == 0:
            cols = c
            break
    if cols is None:
        return None
    rows = total // cols

    # dtype-aware sublane multiple: a vreg holds 8 sublanes of 32-bit, so the
    # clean row granule is 8 for 4-byte, 16 for 2-byte, 32 for 1-byte dtypes.
    sub = 8 * max(1, 4 // max(1, itemsize))

    block_rows = max(1, target_block_bytes // (cols * itemsize))
    if block_rows >= rows:
        return rows, cols, rows  # single full-extent block (always legal)
    block_rows = max(sub, (block_rows // sub) * sub)
    if block_rows >= rows:
        return rows, cols, rows
    return rows, cols, block_rows


def skip_layer(x: jnp.ndarray, *, donate: bool = True,
               target_block_bytes: int = 4 * 1024 * 1024) -> jnp.ndarray:
    """Pallas equivalent of SkipLayer.forward: returns x.

    donate=True aliases the output onto the input buffer
    (input_output_aliases={0: 0}), so no second HBM buffer is allocated.
    donate=False keeps the input intact and returns a fresh copy.
    """
    orig_shape = x.shape
    total = int(x.size)
    if total == 0:
        return x

    view = _choose_2d_view(total, x.dtype.itemsize, target_block_bytes)
    if view is None:
        # No multiple-of-128 factorization: the identity needs no data
        # movement, so return x directly (zero HBM traffic) rather than the
        # old whole-tensor-in-VMEM fallback (latent VMEM OOM).
        # TODO(synk): add a 128-divisible body kernel + tiny remainder kernel
        # if an explicit on-TPU copy is ever required for such shapes.
        return x

    rows, cols, block_rows = view
    x2 = x.reshape(rows, cols)
    itemsize = x.dtype.itemsize

    kernel = pl.pallas_call(
        _copy_kernel,
        out_shape=jax.ShapeDtypeStruct((rows, cols), x.dtype),
        grid_spec=pltpu.PrefetchScalarGridSpec(
            num_scalar_prefetch=0,
            grid=(pl.cdiv(rows, block_rows),),
            in_specs=[pl.BlockSpec((block_rows, cols), lambda i: (i, 0))],
            out_specs=pl.BlockSpec((block_rows, cols), lambda i: (i, 0)),
        ),
        # Pure memory traffic: help XLA overlap this call with neighboring ops.
        cost_estimate=pl.CostEstimate(
            flops=0, transcendentals=0, bytes_accessed=2 * total * itemsize),
        compiler_params=pltpu.CompilerParams(
            # "parallel": lets v7x shard grid steps across its 2 TensorCores;
            # a no-op on single-TC v5e/v6e.
            dimension_semantics=("parallel",),
            # 4 MiB block * 2 buffers * (in + out) = 16 MiB footprint; 32 MiB
            # scoped VMEM is safe on all of v5e / v6e / v7x.
            vmem_limit_bytes=32 * 1024 * 1024,
        ),
        # Alias output 0 onto input 0: no second HBM buffer is allocated.
        input_output_aliases={0: 0} if donate else {},
    )
    out = kernel(x2)
    return out.reshape(orig_shape)


if __name__ == "__main__":
    key = jax.random.PRNGKey(0)
    N, C, H, W = 2, 4, 16, 16
    x = jax.random.normal(key, (N, C, H, W), dtype=jnp.float32)

    # Donation-safe reference copy: skip_layer(donate=True) aliases (and may
    # consume) x's buffer, so compare against a snapshot instead of x itself.
    expected = jnp.copy(x)

    y = skip_layer(x)  # aliased (donated) path
    y = jax.block_until_ready(y)
    assert y.shape == expected.shape, y.shape
    assert y.dtype == expected.dtype, y.dtype
    assert bool(jnp.array_equal(y, expected)), "SkipLayer output differs from input"

    # Non-donating path with a sub-32-bit dtype (exercises dtype-aware tiling).
    xb = jax.random.normal(jax.random.PRNGKey(1), (N, C, H, W)).astype(jnp.bfloat16)
    yb = jax.block_until_ready(skip_layer(xb, donate=False))
    assert yb.shape == xb.shape and yb.dtype == xb.dtype
    assert bool(jnp.array_equal(yb, xb)), "bf16 SkipLayer output differs from input"

    print("KERNEL_OK")
</pallas_src>

<mosaic_0001>
module attributes {stable_mosaic.version = 11 : i64} {
  func.func @_copy_kernel(%arg0: i32, %arg1: memref<1x2048xf32, #tpu.memory_space<vmem>>, %arg2: memref<1x2048xf32, #tpu.memory_space<vmem>>) attributes {dimension_semantics = [#tpu.dimension_semantics<parallel>], iteration_bounds = array<i64: 1>, scalar_prefetch = 0 : i64, scratch_operands = 0 : i64, tpu.core_type = #tpu.core_type<tc>, window_params = [{transform_indices = @transform_0, window_bounds = array<i64: 1, 2048>}, {transform_indices = @transform_1, window_bounds = array<i64: 1, 2048>}]} {
    %c0 = arith.constant 0 : index
    %c0_0 = arith.constant 0 : index
    %0 = vector.load %arg1[%c0, %c0_0] : memref<1x2048xf32, #tpu.memory_space<vmem>>, vector<1x2048xf32>
    %c0_1 = arith.constant 0 : index
    %c0_2 = arith.constant 0 : index
    %1 = vector.load %arg2[%c0_1, %c0_2] : memref<1x2048xf32, #tpu.memory_space<vmem>>, vector<1x2048xf32>
    tpu.vector_store %arg2[%c0_1, %c0_2], %0 {strides = array<i32>} : memref<1x2048xf32, #tpu.memory_space<vmem>>, vector<1x2048xf32>,
    return
  }
  func.func @transform_0(%arg0: i32) -> (i32, i32) {
    %c0_i32 = arith.constant 0 : i32
    %c0_i32_0 = arith.constant 0 : i32
    return %arg0, %c0_i32 : i32, i32
  }
  func.func @transform_1(%arg0: i32) -> (i32, i32) {
    %c0_i32 = arith.constant 0 : i32
    %c0_i32_0 = arith.constant 0 : i32
    return %arg0, %c0_i32 : i32, i32
  }
}

</mosaic_0001>

<bundles_post_ra>
// kernel: tpu_custom_call.1
= control target key start
LH: loop header
LB: loop body
LE: loop exit
PB: predicated region body
PF: predicated region fallthrough
CT: control target
= control target key end

     0   :  { %6 = vsyncpa [#allocation3], 0  ;;  %s116_s0 = inlined_call_operand.hbm [shape: f32[1,2048], index: 0, kind: input, shape index: {}, may-alias: {0,1}]   ;;  %s117_s1 = inlined_call_operand.hbm [shape: f32[1,2048], index: 1, kind: output, shape index: {}, may-alias: {0,1}]  }
   0x1   :  { %7 = vsyncpa [#allocation4], 0  ;;  %s13_s8 = sshll.u32 %s116_s0, 4  ;;  %s98_s9 = smov [#allocation2]   ;;  %s14_s8 = int_to_ptr.hbm [resolvable:$true] %s13_s8 }
   0x2   :  { %s15_s10 = sshll.u32 %s98_s9, 4  ;;  %s16_s10 = int_to_ptr.vmem [resolvable:$true] %s15_s10 }
   0x3   :  { %18 = dma.hbm_to_vmem [thread:$0]  %s14_s8, 256, %s16_s10, [#allocation3]  }
   0x4   :  { %94 = dma.done.wait [#allocation3], 256  }
   0x5   :  { %95 = vsyncadd [#allocation3], 4294967040  ;;  %s99_s11 = smov [#allocation5]   ;;  %s34_s15 = sshll.u32 %s117_s1, 4  ;;  %v23_v0 = vld [vmem:[#allocation2] sm:$0xff]  ;;  %v24_v1 = vld [vmem:[#allocation2 + $0x8] sm:$0xff]  ;;  %s35_s15 = int_to_ptr.hbm [resolvable:$true] %s34_s15 }
   0x6   :  { %s32_s12 = sshll.u32 %s99_s11, 4  ;;  %25 = vst [vmem:[#allocation5] sm:$0xff] %v23_v0  ;;  %s33_s12 = int_to_ptr.vmem [resolvable:$true] %s32_s12 }
   0x7   :  { %26 = vst [vmem:[#allocation5 + $0x8] sm:$0xff] %v24_v1 }
   0x8   :  { %37 = dma.vmem_to_hbm [thread:$0]  %s33_s12, 256, %s35_s15, [#allocation4]  }
   0x9   :  { %96 = dma.done.wait [#allocation4], 256  }
   0xa   :  { %97 = vsyncadd [#allocation4], 4294967040 }
   0xb   :  { %42 = vsyncpa [#allocation3], 1 }
   0xc   :  { %43 = vsyncpa [#allocation4], 1 }

</bundles_post_ra>
